<compile_context>
chip_gen: v5e
topology: v5e:2x2
jax: 0.10.0
libtpu: 0.0.40
codegen_flags: <defaults>
</compile_context>

<pallas_src>
import functools

import jax
import jax.numpy as jnp
import numpy as np
from jax.experimental import pallas as pl
from jax.experimental.pallas import tpu as pltpu


def _hybrid_sim_kernel(results_ref, features_ref, labels_ref, out_ref,
                       xn_ref, iota_ref):
    """Streams the memory bank and accumulates per-core partial class sums
    sum_m <xn, f_m> * onehot(label_m) into the resident out_ref[0] block."""
    m = pl.program_id(1)
    compute_dtype = xn_ref.dtype

    @pl.when(m == 0)
    def _init():
        # L2-normalize the batch once per core (F.normalize(p=2, dim=1)).
        x = results_ref[...]                                       # (B, D) f32
        sq = jnp.sum(x * x, axis=1, keepdims=True)
        xn = x * jax.lax.rsqrt(jnp.maximum(sq, 1e-24))
        xn_ref[...] = xn.astype(compute_dtype)
        # Class-index iota cached once; identical every grid step.
        iota_ref[...] = jax.lax.broadcasted_iota(jnp.int32, iota_ref.shape, 0)
        out_ref[0] = jnp.zeros(out_ref.shape[1:], out_ref.dtype)

    xn = xn_ref[...]                                               # (B, D)  bf16
    f = features_ref[...]                                          # (TM, D) bf16
    # inputs.mm(features.t()): contract D of BOTH operands directly, no
    # transpose/relayout of the feature tile.
    logits = jax.lax.dot_general(
        xn, f, dimension_numbers=(((1,), (1,)), ((), ())),
        preferred_element_type=jnp.float32)                        # (B, TM) f32
    logits_c = logits.astype(compute_dtype)                        # bf16 MXU feed

    # Transposed one-hot (C_pad, TM): lane-dense labels row vs cached iota.
    onehot_t = (labels_ref[...] == iota_ref[...]).astype(compute_dtype)

    # index_add_ over clusters == matmul; f32 accumulation into the resident
    # output block.  (Temperature applied once at finalize, not per step.)
    out_ref[0] += jax.lax.dot_general(
        logits_c, onehot_t, dimension_numbers=(((1,), (1,)), ((), ())),
        preferred_element_type=jnp.float32)                        # (B, C_pad)


def _finalize_kernel(partials_ref, nums_ref, targets_ref, loss_ref, *,
                     inv_temp, batch):
    """Combine per-core partials, masked softmax + NLL (tiny epilogue)."""
    sim = jnp.sum(partials_ref[...], axis=0) * inv_temp            # (B, C_pad)
    nums = nums_ref[...]                                           # (1, C_pad)
    mask = (nums > 0.0).astype(jnp.float32)
    sim = sim / (mask * nums + (1.0 - mask))                       # per-cluster mean

    # Stable masked softmax; exactly equals exp(sim)*mask/(sum(exp*mask)+1e-6):
    # numerator, denominator and the 1e-6 term are all scaled by exp(-row_max).
    row_max = jnp.maximum(jnp.max(sim, axis=1, keepdims=True), 0.0)
    exps = jnp.exp(sim - row_max) * mask
    sums = jnp.sum(exps, axis=1, keepdims=True) + 1e-6 * jnp.exp(-row_max)
    masked_sim = exps * pl.reciprocal(sums)                        # exact recip

    targets = targets_ref[...]                                     # (B, 1) i32
    tgt_iota = jax.lax.broadcasted_iota(jnp.int32, sim.shape, 1)
    tgt_onehot = (targets == tgt_iota).astype(jnp.float32)
    logp = jnp.log(masked_sim + 1e-6)
    picked = jnp.sum(logp * tgt_onehot, axis=1, keepdims=True)     # (B, 1)
    loss_ref[0, 0] = -jnp.sum(picked) * (1.0 / batch)


def _round_up(x, m):
    return ((x + m - 1) // m) * m


def _choose_tile_m(B, D, M, c_pad, num_splits, feat_itemsize, budget_bytes):
    """Largest lane-aligned memory tile whose TOTAL VMEM footprint (feature
    double-buffers + label buffers + cached iota + (C_pad, TM) one-hot
    intermediate + resident output) stays under budget_bytes."""
    onehot_itemsize = feat_itemsize
    fixed = 2 * B * c_pad * 4               # resident output block (dbl-buffered)
    fixed += B * D * (4 + feat_itemsize)    # resident results + xn cache
    per_m = (2 * D * feat_itemsize          # 2x feature pipeline buffers
             + 2 * 8 * 4                    # 2x (1, TM) label buffers (sublane pad)
             + c_pad * 4                    # cached class iota (i32)
             + c_pad * onehot_itemsize      # (C_pad, TM) one-hot intermediate
             + B * (4 + feat_itemsize))     # logits f32 + bf16 copy
    tm = max((budget_bytes - fixed) // per_m, 128)
    tm = min(tm, 8192)
    # Never tile wider than one split's worth of memory rows.
    tm = min(tm, _round_up(-(-M // num_splits), 128))
    return max(128, tm - tm % 128)


def hybrid_memory_forward(results, indexes, features, labels, *, temp=0.05,
                          num_classes=None, tile_m=None, num_core_splits=2,
                          feature_buffers=2, compute_dtype=jnp.bfloat16,
                          vmem_budget_bytes=40 << 20, vmem_limit_bytes=None):
    """Pallas implementation of HybridMemory.forward (returns the scalar loss)."""
    results = jnp.asarray(results, jnp.float32)
    features = jnp.asarray(features)
    labels = jnp.asarray(labels, jnp.int32)
    indexes = jnp.asarray(indexes, jnp.int32)

    B, D = results.shape
    M, Df = features.shape
    assert D == Df

    if num_classes is None:
        # Fallback only: device->host sync + recompile per distinct value.
        num_classes = int(jax.device_get(jnp.max(labels))) + 1
    num_classes = int(num_classes)
    c_pad = max(128, _round_up(num_classes, 128))     # lane-dense class dim

    # Tiny wrapper-side glue: targets = labels[indexes]; per-cluster counts.
    targets = labels[indexes].reshape(B, 1)
    nums = jnp.zeros((c_pad,), jnp.float32).at[labels].add(1.0).reshape(1, c_pad)

    num_splits = max(1, int(num_core_splits))
    itemsize = jnp.dtype(compute_dtype).itemsize
    if tile_m is None:
        tile_m = _choose_tile_m(B, D, M, c_pad, num_splits, itemsize,
                                vmem_budget_bytes)
    tile_m = max(128, int(tile_m) - int(tile_m) % 128)

    per_split = _round_up(-(-M // num_splits), tile_m)
    grid_m = per_split // tile_m
    m_pad = num_splits * per_split

    feats = features.astype(compute_dtype)
    labels_row = labels.reshape(1, M)
    if m_pad != M:
        feats = jnp.pad(feats, ((0, m_pad - M), (0, 0)))
        # label -1 never matches a class column -> padded rows contribute nothing
        labels_row = jnp.pad(labels_row, ((0, 0), (0, m_pad - M)),
                             constant_values=-1)

    if vmem_limit_bytes is None:
        # Above v5e's 16 MiB scoped default, below v7x's 64 MiB physical VMEM.
        vmem_limit_bytes = 48 << 20

    feat_spec_kwargs = {}
    if feature_buffers != 2:
        # Deeper pipelining (e.g. 3) for v7x if DMA is still exposed.
        feat_spec_kwargs["pipeline_mode"] = pl.Buffered(int(feature_buffers))

    partials = pl.pallas_call(
        _hybrid_sim_kernel,
        out_shape=jax.ShapeDtypeStruct((num_splits, B, c_pad), jnp.float32),
        grid_spec=pltpu.PrefetchScalarGridSpec(
            num_scalar_prefetch=0,
            grid=(num_splits, grid_m),
            in_specs=[
                pl.BlockSpec((B, D), lambda c, m: (0, 0)),               # resident
                pl.BlockSpec((tile_m, D),
                             lambda c, m: (c * grid_m + m, 0),
                             **feat_spec_kwargs),                        # streamed
                pl.BlockSpec((1, tile_m),
                             lambda c, m: (0, c * grid_m + m)),          # streamed
            ],
            out_specs=pl.BlockSpec((1, B, c_pad), lambda c, m: (c, 0, 0)),
            scratch_shapes=[
                pltpu.VMEM((B, D), compute_dtype),        # normalized inputs
                pltpu.VMEM((c_pad, tile_m), jnp.int32),   # cached class iota
            ],
        ),
        compiler_params=pltpu.CompilerParams(
            # Split axis parallel (2x streaming on v7x's two TCs, no-op on
            # v5e/v6e); M-reduction axis arbitrary.
            dimension_semantics=("parallel", "arbitrary"),
            vmem_limit_bytes=vmem_limit_bytes,
        ),
    )(results, feats, labels_row)

    finalize = functools.partial(_finalize_kernel,
                                 inv_temp=float(1.0 / temp), batch=B)
    loss = pl.pallas_call(
        finalize,
        out_shape=jax.ShapeDtypeStruct((1, 1), jnp.float32),
        grid_spec=pltpu.PrefetchScalarGridSpec(
            num_scalar_prefetch=0,
            grid=(1,),
            in_specs=[
                pl.BlockSpec((num_splits, B, c_pad), lambda i: (0, 0, 0)),
                pl.BlockSpec((1, c_pad), lambda i: (0, 0)),
                pl.BlockSpec((B, 1), lambda i: (0, 0)),
            ],
            out_specs=pl.BlockSpec((1, 1), lambda i: (0, 0),
                                   memory_space=pltpu.MemorySpace.SMEM),
        ),
    )(partials, nums, targets)
    return loss[0, 0]


def _reference(results, indexes, features, labels, temp, num_classes,
               compute_dtype=None):
    """Pure-JAX reference mirroring the PyTorch forward.  If compute_dtype is
    given, both matmuls see the same quantized operands as the kernel."""
    sq = jnp.sum(results * results, axis=1, keepdims=True)
    x = results * jax.lax.rsqrt(jnp.maximum(sq, 1e-24))
    f = features
    if compute_dtype is not None:
        x = x.astype(compute_dtype)
        f = f.astype(compute_dtype)
    logits = jnp.dot(x, f.T, preferred_element_type=jnp.float32)
    if compute_dtype is not None:
        logits = logits.astype(compute_dtype).astype(jnp.float32)
    onehot = (labels[:, None] == jnp.arange(num_classes)[None, :]).astype(jnp.float32)
    sim = jnp.dot(logits, onehot, preferred_element_type=jnp.float32) / temp
    nums = onehot.sum(0, keepdims=True)
    mask = (nums > 0).astype(jnp.float32)
    sim = sim / (mask * nums + (1.0 - mask))
    exps = jnp.exp(sim) * mask
    masked_sim = exps / (exps.sum(1, keepdims=True) + 1e-6)
    targets = labels[indexes]
    logp = jnp.log(masked_sim + 1e-6)
    B = x.shape[0]
    return -jnp.mean(logp[jnp.arange(B), targets])


if __name__ == "__main__":
    # Small shapes consistent with the module:
    #   num_features D=32, num_memory M=500, batch B=8, 7 clusters, temp=0.05
    B, D, M = 8, 32, 500
    NUM_CLASSES = 7
    temp = 0.05

    key = jax.random.PRNGKey(0)
    k_feat, k_res, k_lab, k_idx = jax.random.split(key, 4)

    # Memory bank features, initialized like _update_feature (row-normalized).
    feat_raw = jax.random.normal(k_feat, (M, D), dtype=jnp.float32)
    features = feat_raw / jnp.maximum(
        jnp.linalg.norm(feat_raw, axis=1, keepdims=True), 1e-12)

    # Cluster labels per memory slot (labels buffer), like _update_label.
    labels = jax.random.randint(k_lab, (M,), 0, NUM_CLASSES, dtype=jnp.int32)

    # Batch of embeddings and their memory indexes.
    results = jax.random.normal(k_res, (B, D), dtype=jnp.float32)
    indexes = jax.random.randint(k_idx, (B,), 0, M, dtype=jnp.int32)

    # tile_m=128 with a 2-way split -> grid (2, 2): exercises the padded tail,
    # the multi-step accumulation and the per-core partial combine.
    loss = hybrid_memory_forward(results, indexes, features, labels,
                                 temp=temp, num_classes=NUM_CLASSES,
                                 tile_m=128, num_core_splits=2)
    loss = jax.block_until_ready(loss)

    # Tight check against a reference with the same bf16-quantized operands
    # (isolates kernel structure from the intentional bf16 cast).
    ref_q = _reference(results, indexes, features, labels, temp, NUM_CLASSES,
                       compute_dtype=jnp.bfloat16)
    np.testing.assert_allclose(np.asarray(loss), np.asarray(ref_q),
                               rtol=1e-3, atol=1e-3)

    # Loose check against the pure-f32 module semantics (bounds the bf16
    # quantization impact on the loss).
    ref_f32 = _reference(results, indexes, features, labels, temp, NUM_CLASSES)
    np.testing.assert_allclose(np.asarray(loss), np.asarray(ref_f32),
                               rtol=5e-2, atol=5e-2)

    print("KERNEL_OK")
</pallas_src>

<mosaic_0001>
module attributes {stable_mosaic.version = 11 : i64} {
  func.func @_hybrid_sim_kernel(%arg0: i32, %arg1: i32, %arg2: memref<8x32xf32, #tpu.memory_space<vmem>>, %arg3: memref<128x32xbf16, #tpu.memory_space<vmem>>, %arg4: memref<1x128xi32, #tpu.memory_space<vmem>>, %arg5: memref<1x8x128xf32, #tpu.memory_space<vmem>>, %arg6: memref<8x32xbf16, #tpu.memory_space<vmem>>, %arg7: memref<128x128xi32, #tpu.memory_space<vmem>>) attributes {dimension_semantics = [#tpu.dimension_semantics<parallel>, #tpu.dimension_semantics<arbitrary>], iteration_bounds = array<i64: 2, 2>, scalar_prefetch = 0 : i64, scratch_operands = 2 : i64, tpu.core_type = #tpu.core_type<tc>, window_params = [{pipeline_mode = #tpu.pipeline_mode<synchronous>, transform_indices = @transform_0, window_bounds = array<i64: 8, 32>}, {transform_indices = @transform_1, window_bounds = array<i64: 128, 32>}, {transform_indices = @transform_2, window_bounds = array<i64: 1, 128>}, {transform_indices = @transform_3, window_bounds = array<i64: 1, 8, 128>}]} {
    %c0_i32 = arith.constant 0 : i32
    %0 = arith.cmpi eq, %arg1, %c0_i32 : i32
    %1 = arith.extui %0 : i1 to i32
    %c0_i32_0 = arith.constant 0 : i32
    %2 = arith.cmpi ne, %1, %c0_i32_0 : i32
    scf.if %2 {
      %c0_15 = arith.constant 0 : index
      %c0_16 = arith.constant 0 : index
      %21 = vector.load %arg2[%c0_15, %c0_16] : memref<8x32xf32, #tpu.memory_space<vmem>>, vector<8x32xf32>
      %22 = arith.mulf %21, %21 : vector<8x32xf32>
      %cst_17 = arith.constant dense<0.000000e+00> : vector<8xf32>
      %23 = vector.multi_reduction <add>, %22, %cst_17 [1] : vector<8x32xf32> to vector<8xf32>
      %24 = vector.shape_cast %23 : vector<8xf32> to vector<8x1xf32>
      %cst_18 = arith.constant 1.000000e-24 : f32
      %25 = vector.broadcast %cst_18 : f32 to vector<8x1xf32>
      %26 = arith.maximumf %24, %25 : vector<8x1xf32>
      %27 = math.rsqrt %26 : vector<8x1xf32>
      %28 = vector.broadcast %27 : vector<8x1xf32> to vector<8x32xf32>
      %29 = arith.mulf %21, %28 : vector<8x32xf32>
      %30 = arith.truncf %29 : vector<8x32xf32> to vector<8x32xbf16>
      %c0_19 = arith.constant 0 : index
      %c0_20 = arith.constant 0 : index
      %31 = vector.load %arg6[%c0_19, %c0_20] : memref<8x32xbf16, #tpu.memory_space<vmem>>, vector<8x32xbf16>
      tpu.vector_store %arg6[%c0_19, %c0_20], %30 {strides = array<i32>} : memref<8x32xbf16, #tpu.memory_space<vmem>>, vector<8x32xbf16>,
      %32 = tpu.iota {dimensions = array<i32: 0>} : vector<128x128xi32>
      %c0_21 = arith.constant 0 : index
      %c0_22 = arith.constant 0 : index
      %33 = vector.load %arg7[%c0_21, %c0_22] : memref<128x128xi32, #tpu.memory_space<vmem>>, vector<128x128xi32>
      tpu.vector_store %arg7[%c0_21, %c0_22], %32 {strides = array<i32>} : memref<128x128xi32, #tpu.memory_space<vmem>>, vector<128x128xi32>,
      %cst_23 = arith.constant 0.000000e+00 : f32
      %34 = vector.broadcast %cst_23 : f32 to vector<8x128xf32>
      %c0_24 = arith.constant 0 : index
      %c0_25 = arith.constant 0 : index
      %c0_26 = arith.constant 0 : index
      %35 = vector.load %arg5[%c0_24, %c0_25, %c0_26] : memref<1x8x128xf32, #tpu.memory_space<vmem>>, vector<1x8x128xf32>
      %36 = vector.shape_cast %35 : vector<1x8x128xf32> to vector<8x128xf32>
      %37 = vector.shape_cast %34 : vector<8x128xf32> to vector<1x8x128xf32>
      tpu.vector_store %arg5[%c0_24, %c0_25, %c0_26], %37 {strides = array<i32>} : memref<1x8x128xf32, #tpu.memory_space<vmem>>, vector<1x8x128xf32>,
    } else {
    }
    %c0 = arith.constant 0 : index
    %c0_1 = arith.constant 0 : index
    %3 = vector.load %arg6[%c0, %c0_1] : memref<8x32xbf16, #tpu.memory_space<vmem>>, vector<8x32xbf16>
    %c0_2 = arith.constant 0 : index
    %c0_3 = arith.constant 0 : index
    %4 = vector.load %arg3[%c0_2, %c0_3] : memref<128x32xbf16, #tpu.memory_space<vmem>>, vector<128x32xbf16>
    %cst = arith.constant dense<0.000000e+00> : vector<8x128xf32>
    %5 = tpu.matmul %3, %4, %cst {dimension_numbers = #tpu.dot_dimension_numbers<[1], [1], [0], [0], [0, 0, 1, 0], [], []>} : vector<8x32xbf16>, vector<128x32xbf16>, vector<8x128xf32> -> vector<8x128xf32>
    %6 = arith.truncf %5 : vector<8x128xf32> to vector<8x128xbf16>
    %c0_4 = arith.constant 0 : index
    %c0_5 = arith.constant 0 : index
    %7 = vector.load %arg4[%c0_4, %c0_5] : memref<1x128xi32, #tpu.memory_space<vmem>>, vector<1x128xi32>
    %c0_6 = arith.constant 0 : index
    %c0_7 = arith.constant 0 : index
    %8 = vector.load %arg7[%c0_6, %c0_7] : memref<128x128xi32, #tpu.memory_space<vmem>>, vector<128x128xi32>
    %9 = vector.broadcast %7 : vector<1x128xi32> to vector<128x128xi32>
    %10 = arith.cmpi eq, %9, %8 : vector<128x128xi32>
    %11 = arith.extui %10 : vector<128x128xi1> to vector<128x128xi32>
    %12 = arith.sitofp %11 : vector<128x128xi32> to vector<128x128xf32>
    %13 = arith.truncf %12 : vector<128x128xf32> to vector<128x128xbf16>
    %c0_8 = arith.constant 0 : index
    %c0_9 = arith.constant 0 : index
    %c0_10 = arith.constant 0 : index
    %14 = vector.load %arg5[%c0_8, %c0_9, %c0_10] : memref<1x8x128xf32, #tpu.memory_space<vmem>>, vector<1x8x128xf32>
    %15 = vector.shape_cast %14 : vector<1x8x128xf32> to vector<8x128xf32>
    %cst_11 = arith.constant dense<0.000000e+00> : vector<8x128xf32>
    %16 = tpu.matmul %6, %13, %cst_11 {dimension_numbers = #tpu.dot_dimension_numbers<[1], [1], [0], [0], [0, 0, 1, 0], [], []>} : vector<8x128xbf16>, vector<128x128xbf16>, vector<8x128xf32> -> vector<8x128xf32>
    %17 = arith.addf %15, %16 : vector<8x128xf32>
    %c0_12 = arith.constant 0 : index
    %c0_13 = arith.constant 0 : index
    %c0_14 = arith.constant 0 : index
    %18 = vector.load %arg5[%c0_12, %c0_13, %c0_14] : memref<1x8x128xf32, #tpu.memory_space<vmem>>, vector<1x8x128xf32>
    %19 = vector.shape_cast %18 : vector<1x8x128xf32> to vector<8x128xf32>
    %20 = vector.shape_cast %17 : vector<8x128xf32> to vector<1x8x128xf32>
    tpu.vector_store %arg5[%c0_12, %c0_13, %c0_14], %20 {strides = array<i32>} : memref<1x8x128xf32, #tpu.memory_space<vmem>>, vector<1x8x128xf32>,
    return
  }
  func.func @transform_0(%arg0: i32, %arg1: i32) -> (i32, i32) {
    %c0_i32 = arith.constant 0 : i32
    %c0_i32_0 = arith.constant 0 : i32
    %c0_i32_1 = arith.constant 0 : i32
    return %c0_i32, %c0_i32_0 : i32, i32
  }
  func.func @transform_1(%arg0: i32, %arg1: i32) -> (i32, i32) {
    %c2_i32 = arith.constant 2 : i32
    %0 = arith.muli %arg0, %c2_i32 : i32
    %1 = arith.addi %0, %arg1 : i32
    %c0_i32 = arith.constant 0 : i32
    %c0_i32_0 = arith.constant 0 : i32
    return %1, %c0_i32 : i32, i32
  }
  func.func @transform_2(%arg0: i32, %arg1: i32) -> (i32, i32) {
    %c2_i32 = arith.constant 2 : i32
    %0 = arith.muli %arg0, %c2_i32 : i32
    %1 = arith.addi %0, %arg1 : i32
    %c0_i32 = arith.constant 0 : i32
    %c0_i32_0 = arith.constant 0 : i32
    return %c0_i32, %1 : i32, i32
  }
  func.func @transform_3(%arg0: i32, %arg1: i32) -> (i32, i32, i32) {
    %c0_i32 = arith.constant 0 : i32
    %c0_i32_0 = arith.constant 0 : i32
    %c0_i32_1 = arith.constant 0 : i32
    return %arg0, %c0_i32, %c0_i32_0 : i32, i32, i32
  }
}

</mosaic_0001>

<bundles_post_ra>
// kernel: tpu_custom_call.1
= control target key start
LH: loop header
LB: loop body
LE: loop exit
PB: predicated region body
PF: predicated region fallthrough
CT: control target
= control target key end

     0   :  { %8 = vsyncpa [#allocation5], 0  ;;  %s1015_s0 = inlined_call_operand.vmem [shape: f32[8,32], index: 0, kind: input, shape index: {}]   ;;  %s1016_s1 = inlined_call_operand.vmem [shape: bf16[512,32], index: 1, kind: input, shape index: {}]   ;;  %s1017_s2 = inlined_call_operand.vmem [shape: s32[1,512], index: 2, kind: input, shape index: {}]   ;;  %s1018_s3 = inlined_call_operand.hbm [shape: f32[2,8,128], index: 3, kind: output, shape index: {}]  }
   0x1   :  { %10 = vsyncpa [#allocation5 + $0x1], 0  ;;  %s854_s12 = smov 0   ;;  %s856_s13 = smov 0  }
   0x2   :  { %s858_s14 = smov 0   ;;  %s860_s15 = smov 0  }
   0x3   :  { %s862_s16 = smov 0   ;;  %s864_s17 = smov 0  }
   0x4   :  { %s866_s18 = smov 0   ;;  %s868_s19 = smov 0  }
   0x5 LB: > { %s568_s20 = sadd.s32 4294967295, %s830_s19   ;;  %s569_s21 = sadd.s32 4294967294, %s830_s19   ;;  %s830_s19 = sphi %s868_s19, %s16_s19   ;;  %s826_s18 = sphi %s866_s18, %s1027_s18   ;;  %s822_s17 = sphi %s864_s17, %s1026_s17   ;;  %s818_s16 = sphi %s862_s16, %s1025_s16   ;;  %s814_s15 = sphi %s860_s15, %s1024_s15   ;;  %s810_s14 = sphi %s858_s14, %s1023_s14   ;;  %s806_s13 = sphi %s856_s13, %s1022_s13   ;;  %s802_s12 = sphi %s854_s12, %s1021_s12  }
   0x6   : > { %s25_s22 = sadd.s32 1, %s822_s17  ;;  %s28_s23 = sadd.s32 1, %s826_s18 }
   0x7   : > { %p26_p0 = scmp.ge.s32.totalorder %s25_s22, 2  ;;  %p126_p1 = scmp.ne.s32.totalorder %s810_s14, %s806_s13 }
   0x8   : > { %p127_p2 = scmp.eq.s32.totalorder %s568_s20, 3  ;;  %p132_p4 = scmp.ne.s32.totalorder %s806_s13, %s802_s12 }
   0x9   : > { %s1029_s22 = smov (%p26_p0, %s25_s22), 0  ;;  %s1031_s23 = smov (!%p26_p0, %s28_s23), %s826_s18 }
   0xa   : > { %p903_p3 = por %p127_p2, %p126_p1  ;;  %p30_p5 = scmp.ge.s32.totalorder %s1031_s23, 2 }
   0xb   : > { %p133_p6 = scmp.eq.s32.totalorder %s569_s21, 3  ;;  %p576_p7 = scmp.ge.s32.totalorder %s830_s19, 1 }
   0xc   : > { %p177_p8 = scmp.lt.s32.totalorder %s830_s19, 5  ;;  %s1033_s23 = smov (%p30_p5, %s1031_s23), 0 }
   0xd   : > { %p913_p9 = por %p133_p6, %p132_p4  ;;  %s113_s26 = ssub.s32 %s826_s18, %s1033_s23 }
   0xe   : > { %p178_p10 = pnand %p576_p7, %p177_p8  ;;  %s116_s27 = sadd.s32 1, %s810_s14 }
   0xf   : > { %p114_p11 = scmp.eq.s32.totalorder %s113_s26, 0  ;;  %s205_s29 = sand.u32 (!%p178_p10), 1, %s806_s13  }
  0x10   : > { %181 = sbr.rel (%p178_p10) target bundleno = 500 (0x1f4), region = 32  ;;  %s578_s30 = sshll.u32 (!%p178_p10), %s818_s16, 1 }
  0x11   : > { %s921_s28 = scalar_select %p114_p11, %s810_s14, %s116_s27  }
  0x12   : > { %s577_s4 = sshll.u32 (!%p178_p10), %s205_s29, 3  ;;  %s209_s5 = sadd.s32 (!%p178_p10), %s814_s15, %s578_s30 }
  0x13   : > { %s579_s6 = sshll.u32 (!%p178_p10), %s209_s5, 4  ;;  %p220_p13 = scmp.lt.s32.totalorder (!%p178_p10), %s209_s5, 3 }
  0x14   : > { %p211_p12 = scmp.lt.s32.totalorder (!%p178_p10), %s579_s6, 63  ;;  %s939_s26 = scalar_lea.vmem (!%p178_p10), [#allocation4], %s577_s4 }
  0x15   : > { %s1037_s5 = smov (!%p220_p13, %s209_s5), 3  ;;  %p582_p0 = scmp.ne.s32.totalorder %s814_s15, 0 }
  0x16   : > { %s1035_s6 = smov (!%p211_p12, %s579_s6), 63  ;;  %s222_s21 = scalar_lea.vmem %s1017_s2, %s1037_s5 }
  0x17   : > { %s580_s7 = sshll.u32 %s1035_s6, 2  ;;  %228 = sbr.rel (%p582_p0) target bundleno = 173 (0xad), region = 36 }
  0x18   : > { %s933_s10 = scalar_lea.vmem %s1016_s1, %s580_s7 }
  0x1c   : > { %v229_v0 = vld [vmem:[%s1015_s0] sm:$0xff]  ;;  %vm231_vm0 = vcmask 261120   ;;  %v250_v3 = vlaneseq  ;;  %v832_v22 = vmov 0.0   ;;  %vm248_vm4 = vcmask 257024  }
  0x1d   : > { %v230_v1 = vmul.f32 %v229_v0, %v229_v0  ;;  %283 = vst [vmem:[%s939_s26] sm:$0xff] %v832_v22 }
  0x1e   : > { %v251_v4 = vshrl.u32 %v250_v3, 7 }
  0x1f   : > { %v232_v2 = vsel %vm231_vm0, %v230_v1, 0.0 }
  0x20   : > { %233 = vadd.xlane.f32.xlu0 %v232_v2  ;;  %v252_v5 = vadd.s32 8, %v251_v4  ;;  %v253_v6 = vadd.s32 16, %v251_v4  ;;  %v254_v7 = vadd.s32 24, %v251_v4  ;;  %267 = vst [vmem:[#allocation3 + $0x30] sm:$0xff] %v251_v4  ;;  %v255_v8 = vadd.s32 32, %v251_v4 }
  0x21   : > { %v256_v9 = vadd.s32 40, %v251_v4  ;;  %v257_v10 = vadd.s32 48, %v251_v4  ;;  %v258_v11 = vadd.s32 56, %v251_v4  ;;  %v259_v12 = vadd.s32 64, %v251_v4 }
  0x22   : > { %268 = vst [vmem:[#allocation3] sm:$0xff] %v252_v5  ;;  %v260_v13 = vadd.s32 72, %v251_v4  ;;  %v261_v14 = vadd.s32 80, %v251_v4  ;;  %v262_v15 = vadd.s32 88, %v251_v4  ;;  %v263_v17 = vadd.s32 96, %v251_v4 }
  0x23   : > { %269 = vst [vmem:[#allocation3 + $0x58] sm:$0xff] %v253_v6  ;;  %v264_v19 = vadd.s32 104, %v251_v4  ;;  %v265_v20 = vadd.s32 112, %v251_v4  ;;  %v266_v21 = vadd.s32 120, %v251_v4 }
  0x24   : > { %270 = vst [vmem:[#allocation3 + $0x18] sm:$0xff] %v254_v7 }
  0x25   : > { %271 = vst [vmem:[#allocation3 + $0x50] sm:$0xff] %v255_v8 }
  0x26   : > { %272 = vst [vmem:[#allocation3 + $0x68] sm:$0xff] %v256_v9 }
  0x27   : > { %273 = vst [vmem:[#allocation3 + $0x8] sm:$0xff] %v257_v10 }
  0x28   : > { %274 = vst [vmem:[#allocation3 + $0x48] sm:$0xff] %v258_v11 }
  0x29   : > { %275 = vst [vmem:[#allocation3 + $0x40] sm:$0xff] %v259_v12 }
  0x2a   : > { %276 = vst [vmem:[#allocation3 + $0x20] sm:$0xff] %v260_v13 }
  0x2b   : > { %277 = vst [vmem:[#allocation3 + $0x10] sm:$0xff] %v261_v14 }
  0x2c   : > { %278 = vst [vmem:[#allocation3 + $0x38] sm:$0xff] %v262_v15 }
  0x2d   : > { %279 = vst [vmem:[#allocation3 + $0x60] sm:$0xff] %v263_v17 }
  0x2e   : > { %280 = vst [vmem:[#allocation3 + $0x70] sm:$0xff] %v264_v19 }
  0x2f   : > { %281 = vst [vmem:[#allocation3 + $0x78] sm:$0xff] %v265_v20 }
  0x30   : > { %282 = vst [vmem:[#allocation3 + $0x28] sm:$0xff] %v266_v21 }
  0x93   : > { %v234_v16 = vpop.xlane.xlu0 %233 }
  0x94   : > { %v235_v18 = vmax.f32 %v234_v16, 1e-24 }
  0x96   : > { %733 = vrsqrt.f32 %v235_v18  ;;  %vm242_vm2 = vweird.f32 %v235_v18 }
  0x9c   : > { %v734_v23 = vpop.eup %733 }
  0x9d   : > { %v237_v24 = vmul.f32 %v734_v23, %v235_v18  ;;  %vm243_vm1 = vweird.f32 %v734_v23 }
  0x9e   : > { %vm244_vm3 = vmor %vm242_vm2, %vm243_vm1 }
  0x9f   : > { %v238_v25 = vmul.f32 %v734_v23, %v237_v24 }
  0xa1   : > { %v239_v26 = vmul.f32 0.5, %v238_v25 }
  0xa3   : > { %v240_v27 = vsub.f32 1.5, %v239_v26 }
  0xa5   : > { %v241_v28 = vmul.f32 %v734_v23, %v240_v27 }
  0xa7   : > { %v245_v29 = vsel %vm244_vm3, %v734_v23, %v241_v28 }
  0xa8   : > { %v246_v30 = vmul.f32 %v245_v29, %v229_v0 }
  0xaa   : > { %v247_v31 = vpack.c.bf16 %v246_v30, %v246_v30 }
  0xac   : > { %249 = vst.msk [vmem:[#allocation2] sm:$0xf] %vm248_vm4, %v247_v31 }
  0xad PF: > { %v659_v32 = vld [vmem:[%s933_s10 + $0x38] sm:$0xff]  ;;  %vm341_vm5 = vcmask 261120   ;;  %v658_v34 = vld [vmem:[%s933_s10 + $0x30] sm:$0xff]  ;;  %v657_v36 = vld [vmem:[%s933_s10 + $0x28] sm:$0xff]  ;;  %v833_v48 = vmov 1.0|1.0  }
  0xae   : > { %v367_v33 = vsel %vm341_vm5, %v659_v32, 0  ;;  %v364_v35 = vsel %vm341_vm5, %v658_v34, 0  ;;  %v361_v37 = vsel %vm341_vm5, %v657_v36, 0  ;;  %v656_v38 = vld [vmem:[%s933_s10 + $0x20] sm:$0xff]  ;;  %v655_v40 = vld [vmem:[%s933_s10 + $0x18] sm:$0xff]  ;;  %v399_v43 = vld [vmem:[#allocation3 + $0x28] sm:$0xff] }
  0xaf   : > { %369 = vmatpush.bf16.xpose.msra.mxu0 %v367_v33  ;;  %v358_v39 = vsel %vm341_vm5, %v656_v38, 0  ;;  %v355_v41 = vsel %vm341_vm5, %v655_v40, 0  ;;  %v398_v42 = vld [vmem:[#allocation3 + $0x78] sm:$0xff]  ;;  %v654_v45 = vld [vmem:[%s933_s10 + $0x10] sm:$0xff]  ;;  %v396_v46 = vld [vmem:[#allocation3 + $0x60] sm:$0xff]  ;;  %s649_s5 = sshll.u32 %s818_s16, 3 }
  0xb0   : > { %v735_v44 = vld [vmem:[%s222_s21] ss:$0 sm:$0xff]  ;;  %v397_v47 = vld [vmem:[#allocation3 + $0x70] sm:$0xff]  ;;  %v352_v49 = vsel %vm341_vm5, %v654_v45, 0  ;;  %v653_v50 = vld [vmem:[%s933_s10 + $0x8] sm:$0xff]  ;;  %s484_s8 = scalar_lea.hbm %s1018_s3, %s649_s5  ;;  %s486_s9 = sshll.u32 %s939_s26, 4  ;;  %s487_s9 = int_to_ptr.vmem [resolvable:$true] %s486_s9 }
  0xb1   : > { %vm415_vm6 = vcmp.eq.s32.totalorder %v735_v44, %v398_v42  ;;  %vm416_vm7 = vcmp.eq.s32.totalorder %v735_v44, %v399_v43  ;;  %vm413_vm9 = vcmp.eq.s32.totalorder %v735_v44, %v396_v46  ;;  %vm414_vm10 = vcmp.eq.s32.totalorder %v735_v44, %v397_v47  ;;  %v394_v51 = vld [vmem:[#allocation3 + $0x10] sm:$0xff]  ;;  %v395_v52 = vld [vmem:[#allocation3 + $0x38] sm:$0xff]  ;;  %v392_v55 = vld [vmem:[#allocation3 + $0x40] sm:$0xff]  ;;  %s474_s11 = scalar_lea.sflag [#allocation5], %s205_s29  ;;  %s756_s30 = scalar_lea.hbm %s1018_s3, 16 }
  0xb2   : > { %vm632_vm8 = vmpackc.low %vm416_vm7, %vm415_vm6  ;;  %v349_v53 = vsel %vm341_vm5, %v653_v50, 0  ;;  %vm411_vm12 = vcmp.eq.s32.totalorder %v735_v44, %v394_v51  ;;  %vm412_vm13 = vcmp.eq.s32.totalorder %v735_v44, %v395_v52  ;;  %v652_v54 = vld [vmem:[%s933_s10] sm:$0xff]  ;;  %vm409_vm15 = vcmp.eq.s32.totalorder %v735_v44, %v392_v55  ;;  %v390_v58 = vld [vmem:[#allocation3 + $0x8] sm:$0xff]  ;;  %s488_s10 = sshll.u32 %s484_s8, 4  ;;  %s489_s10 = int_to_ptr.hbm [resolvable:$true] %s488_s10 }
  0xb3   : > { %633 = vmatpush.bf16.xpose.msk.msra.mxu1 %vm632_vm8, %v833_v48  ;;  %vm634_vm11 = vmpackc.low %vm414_vm10, %vm413_vm9  ;;  %v393_v56 = vld [vmem:[#allocation3 + $0x20] sm:$0xff]  ;;  %v346_v57 = vsel %vm341_vm5, %v652_v54, 0  ;;  %v391_v59 = vld [vmem:[#allocation3 + $0x48] sm:$0xff]  ;;  %vm407_vm2 = vcmp.eq.s32.totalorder %v735_v44, %v390_v58  ;;  %s750_s20 = sshra.s32 %s489_s10, 4  ;;  %s751_s20 = int_to_ptr.hbm [resolvable:$true] %s750_s20 }
  0xb4   : > { %vm636_vm14 = vmpackc.low %vm412_vm13, %vm411_vm12  ;;  %vm410_vm0 = vcmp.eq.s32.totalorder %v735_v44, %v393_v56  ;;  %v284_v60 = vld [vmem:[#allocation2] sm:$0xf]  ;;  %vm408_vm3 = vcmp.eq.s32.totalorder %v735_v44, %v391_v59  ;;  %v388_v61 = vld [vmem:[#allocation3 + $0x50] sm:$0xff]  ;;  %s752_s21 = scalar_lea.hbm %s751_s20, 8  ;;  %p757_p5 = scmp.lt.s32.totalorder %s751_s20, %s1018_s3 }
  0xb5   : > { %vm638_vm1 = vmpackc.low %vm410_vm0, %vm409_vm15  ;;  %v389_v62 = vld [vmem:[#allocation3 + $0x68] sm:$0xff]  ;;  %vm405_vm6 = vcmp.eq.s32.totalorder %v735_v44, %v388_v61  ;;  %v386_v63 = vld [vmem:[#allocation3 + $0x58] sm:$0xff]  ;;  %p753_p1 = scmp.ne.s32.totalorder %s751_s20, %s752_s21  ;;  %p758_p6 = scmp.lt.s32.totalorder %s756_s30, %s752_s21 }
  0xb6   : > { %vm640_vm4 = vmpackc.low %vm408_vm3, %vm407_vm2  ;;  %vm406_vm7 = vcmp.eq.s32.totalorder %v735_v44, %v389_v62  ;;  %v387_v0 = vld [vmem:[#allocation3 + $0x18] sm:$0xff]  ;;  %vm403_vm9 = vcmp.eq.s32.totalorder %v735_v44, %v386_v63  ;;  %v384_v1 = vld [vmem:[#allocation3 + $0x30] sm:$0xff] }
  0xb7   : > { %370 = vmatpush.bf16.xpose.msra.mxu0 %v364_v35  ;;  %vm642_vm8 = vmpackc.low %vm406_vm7, %vm405_vm6  ;;  %vm404_vm10 = vcmp.eq.s32.totalorder %v735_v44, %v387_v0  ;;  %v385_v2 = vld [vmem:[#allocation3] sm:$0xff]  ;;  %p754_p2 = pnand %p753_p1, %p903_p3  ;;  %p759_p7 = por %p758_p6, %p757_p5 }
  0xb8   : > { %vm402_vm12 = vcmp.eq.s32.totalorder %v735_v44, %v385_v2  ;;  %v457_v6 = vld [vmem:[%s939_s26] sm:$0xff] }
  0xb9   : > { %p755_p4 = pneg %p754_p2 }
  0xbb   : > { %635 = vmatpush.bf16.xpose.msk.msra.mxu1 %vm634_vm11, %v833_v48  ;;  %vm644_vm11 = vmpackc.low %vm404_vm10, %vm403_vm9  ;;  %p760_p8 = pnand %p759_p7, %p755_p4 }
  0xbf   : > { %371 = vmatpush.bf16.xpose.msra.mxu0 %v361_v37 }
  0xc3   : > { %637 = vmatpush.bf16.xpose.msk.msra.mxu1 %vm636_vm14, %v833_v48 }
  0xc7   : > { %372 = vmatpush.bf16.xpose.msra.mxu0 %v358_v39 }
  0xcb   : > { %639 = vmatpush.bf16.xpose.msk.msra.mxu1 %vm638_vm1, %v833_v48 }
  0xcf   : > { %373 = vmatpush.bf16.xpose.msra.mxu0 %v355_v41 }
  0xd3   : > { %641 = vmatpush.bf16.xpose.msk.msra.mxu1 %vm640_vm4, %v833_v48 }
  0xd7   : > { %374 = vmatpush.bf16.xpose.msra.mxu0 %v352_v49 }
  0xdb   : > { %643 = vmatpush.bf16.xpose.msk.msra.mxu1 %vm642_vm8, %v833_v48 }
  0xdf   : > { %375 = vmatpush.bf16.xpose.msra.mxu0 %v349_v53 }
  0xe3   : > { %645 = vmatpush.bf16.xpose.msk.msra.mxu1 %vm644_vm11, %v833_v48 }
  0xe7   : > { %376 = vmatpush.bf16.xpose.msra.mxu0 %v346_v57 }
  0xee   : > { %615 = vmatmul.msk.bf16.vlgmr.msra.gmra.mxu0 %vm341_vm5, %v284_v60  ;;  %vm401_vm5 = vcmp.eq.s32.totalorder %v735_v44, %v384_v1 }
  0xef   : > { %vm646_vm13 = vmpackc.low %vm402_vm12, %vm401_vm5 }
  0xf0   : > { %647 = vmatpush.bf16.xpose.msk.msra.mxu1 %vm646_vm13, %v833_v48 }
 0x16b   : > { %v378_v3 = vpop.f32.mrf.mxu0 }
 0x16c   : > { %v382_v4 = vpack.c.bf16 %v378_v3, %v378_v3 }
 0x16e   : > { %466 = vmatmul.bf16.vlgmr.msra.gmra.mxu1 %v382_v4 }
 0x173   : > { %v380_v5 = vpop.f32.mrf.mxu0 }
 0x1eb   : > { %v467_v7 = vpop.f32.mrf.mxu1 }
 0x1ec   : > { %v471_v8 = vadd.f32 %v467_v7, %v457_v6 }
 0x1ee   : > { %472 = vst [vmem:[%s939_s26] sm:$0xff] %v471_v8 }
 0x1ef   : > { %763 = shalt.err (!%p760_p8)
}
 0x1f0   : > { %660 = dma.vmem_to_hbm [thread:$0]  (%p903_p3), %s487_s9, 128, %s489_s10, %s474_s11  }
 0x1f3   : > { %v469_v9 = vpop.f32.mrf.mxu1 }
 0x1f4 PF: > { %p666_p10 = scmp.ge.s32.totalorder %s830_s19, 2  ;;  %s500_s29 = sand.u32 1, %s802_s12  }
 0x1f5   : > { %s501_s26 = scalar_lea.sflag [#allocation5], %s500_s29 }
 0x1f6   : > { %p663_p11 = pnand %p666_p10, %p913_p9 }
 0x1f8   : > { %p664_p12 = pneg %p663_p11 }
 0x1fa   : > { %797 = dma.done.wait (%p664_p12), %s501_s26, 128  }
 0x1fb   : > { %799 = vsyncadd (%p664_p12), %s501_s26, 4294967168  ;;  %s16_s19 = sadd.s32 1, %s830_s19   ;;  %s1021_s12 = smov %s806_s13 }
 0x1fc   : > { %p13_p13 = scmp.ge.s32.totalorder %s16_s19, 6   ;;  %s1022_s13 = smov %s810_s14 }
 0x1fd   : > { %s1023_s14 = smov %s921_s28  ;;  %s1024_s15 = smov %s822_s17 }
 0x1fe   : > { %s1025_s16 = smov %s826_s18  ;;  %s1026_s17 = smov %s1029_s22 }
 0x1ff   : > { %s1027_s18 = smov %s1033_s23  ;;  %15 = sbr.rel (!%p13_p13) target bundleno = 5 (0x5), region = 74 }
 0x204   :  { %507 = vsyncpa [#allocation5], 1 }
 0x205   :  { %509 = vsyncpa [#allocation5 + $0x1], 1 }

</bundles_post_ra>
